<compile_context>
chip_gen: v6e
topology: v6e:2x2x1
jax: 0.10.0
libtpu: 0.0.40
codegen_flags: <defaults>
</compile_context>

<pallas_src>
import functools

import jax
import jax.numpy as jnp
from jax.experimental import pallas as pl
from jax.experimental.pallas import tpu as pltpu

GAMMA = 0.5        # SNDEDynamic.gamma
INPUT_DIM = 128    # D  (lane-full)
HID = 128          # f_model hidden width
GHID = 128         # g_fn hidden width


def snde_dynamic_kernel(
    u_ref,                     # (TB, D)  f32
    w1g_ref, b1g_ref,          # fused first layer [W1_f | Wg] : (D, HID+GHID) bf16, (1, HID+GHID) f32
    w2g_ref, b2_ref,           # block_diag(W2, Wg^T) : (HID+GHID, HID+D) bf16, (1, HID) f32
    w3_ref, b3_ref,            # f_model layer 3 : (HID, D) bf16, (1, D) f32
    wv_ref, bv_ref,            # g_fn scalar head : (1, GHID) f32, (1, 1) f32
    out_ref,                   # (TB, D)  du/dt
):
    # TODO(synk): f_model ignores t (autonomous ODEFunc); add t-conditioning if the
    # concrete user-supplied f_model uses it.
    u = u_ref[...]                                   # (TB, D) f32

    # ---- fused first layers of f_model and g_fn: one 128x256 bf16 MXU matmul ----
    z = jnp.tanh(
        jnp.dot(u.astype(jnp.bfloat16), w1g_ref[...],
                preferred_element_type=jnp.float32) + b1g_ref[...]
    )                                                # (TB, HID+GHID) f32
    h1 = z[:, :HID]                                  # f_model hidden 1
    hg = z[:, HID:]                                  # g_fn hidden

    # ---- g_fn(u): scalar per sample (VPU multiply + lane reduce; no tiny-N matmul) ----
    wv = wv_ref[...]                                 # (1, GHID) f32
    g_u = jnp.sum(hg * wv, axis=-1, keepdims=True) + bv_ref[...]        # (TB, 1)

    # ---- fused f_model layer 2 + analytic grad of g_fn: one 256-contraction matmul ----
    # grad[b, j] = sum_i (1 - hg[b,i]^2) * wv[i] * Wg[j, i]
    dg = (1.0 - hg * hg) * wv                        # (TB, GHID) f32
    lhs2 = jnp.concatenate([h1, dg], axis=-1).astype(jnp.bfloat16)      # (TB, HID+GHID)
    zz = jnp.dot(lhs2, w2g_ref[...], preferred_element_type=jnp.float32)  # (TB, HID+D)
    h2 = jnp.tanh(zz[:, :HID] + b2_ref[...])         # f_model hidden 2
    grad = zz[:, HID:]                               # (TB, D)  d g / d u

    # ---- f_model output layer ----
    f_u = jnp.dot(h2.astype(jnp.bfloat16), w3_ref[...],
                  preferred_element_type=jnp.float32) + b3_ref[...]     # (TB, D)

    # ---- pseudo-inverse of the 1x1 matrix G G^T = ||grad||^2 (f32 guard, EUP recip) ----
    denom = jnp.sum(grad * grad, axis=-1, keepdims=True)                # (TB, 1)
    inv = jnp.where(denom > 0.0, pl.reciprocal(denom, approx=True), 0.0)

    # ---- stable term and output ----
    out_ref[...] = f_u - GAMMA * g_u * inv * grad


def init_params(key, input_dim=INPUT_DIM, hidden_dim=HID, g_hidden_dim=GHID):
    """Deterministic synthetic parameters (PyTorch nn.Linear-style uniform init),
    pre-packed for the kernel (fused first layer, block-diagonal layer2+grad, bf16
    matmul weights, f32 biases/head)."""

    def linear(k, fan_in, fan_out):
        k1, k2 = jax.random.split(k)
        bound = 1.0 / jnp.sqrt(fan_in)
        w = jax.random.uniform(k1, (fan_in, fan_out), jnp.float32, -bound, bound)
        b = jax.random.uniform(k2, (1, fan_out), jnp.float32, -bound, bound)
        return w, b

    keys = jax.random.split(key, 5)
    w1, b1 = linear(keys[0], input_dim, hidden_dim)      # f_model layer 1
    w2, b2 = linear(keys[1], hidden_dim, hidden_dim)     # f_model layer 2
    w3, b3 = linear(keys[2], hidden_dim, input_dim)      # f_model layer 3
    wg, bg = linear(keys[3], input_dim, g_hidden_dim)    # g_fn hidden
    wv, bv = linear(keys[4], g_hidden_dim, 1)            # g_fn scalar head

    # Fuse the two first layers that share input u into one matmul.
    w1g = jnp.concatenate([w1, wg], axis=1).astype(jnp.bfloat16)   # (D, HID+GHID)
    b1g = jnp.concatenate([b1, bg], axis=1)                        # (1, HID+GHID) f32

    # Block-diagonal pack of f_model layer 2 and the grad matmul (requires HID==D).
    w2g = jnp.zeros((hidden_dim + g_hidden_dim, hidden_dim + input_dim), jnp.float32)
    w2g = w2g.at[:hidden_dim, :hidden_dim].set(w2)
    w2g = w2g.at[hidden_dim:, hidden_dim:].set(jnp.transpose(wg))
    w2g = w2g.astype(jnp.bfloat16)                                 # (2H, 2H)

    return (
        w1g, b1g,
        w2g, b2,
        w3.astype(jnp.bfloat16), b3,
        jnp.transpose(wv),                                         # (1, GHID) f32
        bv.reshape(1, 1),                                          # (1, 1)   f32
    )


@functools.partial(jax.jit, static_argnames=("tb",))
def snde_dynamic_forward(t, u, params, tb=256):
    """Equivalent of SNDEDynamic.forward(t, u) -> du/dt, shape (B, D)."""
    del t  # autonomous f_model (TODO(synk): plumb t via scalar prefetch if needed)
    w1g, b1g, w2g, b2, w3, b3, wv, bv = params

    B, D = u.shape
    tb = max(8, min(tb, B))
    tb = (tb // 8) * 8
    pad = (-B) % tb
    if pad:
        u = jnp.pad(u, ((0, pad), (0, 0)))
    Bp = B + pad

    def const_spec(arr):
        return pl.BlockSpec(arr.shape, lambda i: (0, 0))

    weights = (w1g, b1g, w2g, b2, w3, b3, wv, bv)

    out = pl.pallas_call(
        snde_dynamic_kernel,
        out_shape=jax.ShapeDtypeStruct((Bp, D), jnp.float32),
        grid=(Bp // tb,),
        in_specs=[pl.BlockSpec((tb, D), lambda i: (i, 0))]
                 + [const_spec(a) for a in weights],
        out_specs=pl.BlockSpec((tb, D), lambda i: (i, 0)),
        compiler_params=pltpu.CompilerParams(
            dimension_semantics=("parallel",),
            vmem_limit_bytes=32 * 1024 * 1024,
        ),
    )(u, *weights)
    return out[:B]


def snde_dynamic_reference(t, u, params):
    """Pure-JAX reference of the same forward pass (mirrors the kernel's bf16-operand
    / f32-accumulate matmul numerics so the comparison is tight)."""
    del t
    w1g, b1g, w2g, b2, w3, b3, wv, bv = params
    w1, wg = w1g[:, :HID], w1g[:, HID:]
    b1, bg = b1g[:, :HID], b1g[:, HID:]
    w2 = w2g[:HID, :HID]
    wgT = w2g[HID:, HID:]

    ub = u.astype(jnp.bfloat16)
    h1 = jnp.tanh(jnp.dot(ub, w1, preferred_element_type=jnp.float32) + b1)
    hg = jnp.tanh(jnp.dot(ub, wg, preferred_element_type=jnp.float32) + bg)
    h2 = jnp.tanh(jnp.dot(h1.astype(jnp.bfloat16), w2,
                          preferred_element_type=jnp.float32) + b2)
    f_u = jnp.dot(h2.astype(jnp.bfloat16), w3,
                  preferred_element_type=jnp.float32) + b3

    g_u = jnp.sum(hg * wv, axis=-1, keepdims=True) + bv
    dg = (1.0 - hg * hg) * wv
    grad = jnp.dot(dg.astype(jnp.bfloat16), wgT, preferred_element_type=jnp.float32)
    denom = jnp.sum(grad * grad, axis=-1, keepdims=True)
    inv = jnp.where(denom > 0.0, 1.0 / denom, 0.0)
    return f_u - GAMMA * g_u * inv * grad


if __name__ == "__main__":
    batch = 16           # multiple of 8; with tb=8 the grid has 2 parallel steps

    root = jax.random.PRNGKey(0)
    k_params, k_u = jax.random.split(root)

    params = init_params(k_params)
    u = jax.random.normal(k_u, (batch, INPUT_DIM), jnp.float32)
    t = jnp.float32(0.1)

    du_dt = snde_dynamic_forward(t, u, params, tb=8)
    du_dt = jax.block_until_ready(du_dt)

    assert du_dt.shape == (batch, INPUT_DIM)
    assert bool(jnp.all(jnp.isfinite(du_dt)))

    ref = snde_dynamic_reference(t, u, params)
    assert bool(jnp.allclose(du_dt, ref, atol=1e-2, rtol=1e-2))

    print("KERNEL_OK")
</pallas_src>

<mosaic_0001>
module attributes {stable_mosaic.version = 11 : i64} {
  func.func @snde_dynamic_kernel(%arg0: i32, %arg1: memref<8x128xf32, #tpu.memory_space<vmem>>, %arg2: memref<128x256xbf16, #tpu.memory_space<vmem>>, %arg3: memref<1x256xf32, #tpu.memory_space<vmem>>, %arg4: memref<256x256xbf16, #tpu.memory_space<vmem>>, %arg5: memref<1x128xf32, #tpu.memory_space<vmem>>, %arg6: memref<128x128xbf16, #tpu.memory_space<vmem>>, %arg7: memref<1x128xf32, #tpu.memory_space<vmem>>, %arg8: memref<1x128xf32, #tpu.memory_space<vmem>>, %arg9: memref<1x1xf32, #tpu.memory_space<vmem>>, %arg10: memref<8x128xf32, #tpu.memory_space<vmem>>) attributes {dimension_semantics = [#tpu.dimension_semantics<parallel>], iteration_bounds = array<i64: 2>, scalar_prefetch = 0 : i64, scratch_operands = 0 : i64, tpu.core_type = #tpu.core_type<tc>, window_params = [{transform_indices = @transform_0, window_bounds = array<i64: 8, 128>}, {pipeline_mode = #tpu.pipeline_mode<synchronous>, transform_indices = @transform_1, window_bounds = array<i64: 128, 256>}, {pipeline_mode = #tpu.pipeline_mode<synchronous>, transform_indices = @transform_2, window_bounds = array<i64: 1, 256>}, {pipeline_mode = #tpu.pipeline_mode<synchronous>, transform_indices = @transform_3, window_bounds = array<i64: 256, 256>}, {pipeline_mode = #tpu.pipeline_mode<synchronous>, transform_indices = @transform_4, window_bounds = array<i64: 1, 128>}, {pipeline_mode = #tpu.pipeline_mode<synchronous>, transform_indices = @transform_5, window_bounds = array<i64: 128, 128>}, {pipeline_mode = #tpu.pipeline_mode<synchronous>, transform_indices = @transform_6, window_bounds = array<i64: 1, 128>}, {pipeline_mode = #tpu.pipeline_mode<synchronous>, transform_indices = @transform_7, window_bounds = array<i64: 1, 128>}, {pipeline_mode = #tpu.pipeline_mode<synchronous>, transform_indices = @transform_8, window_bounds = array<i64: 1, 1>}, {transform_indices = @transform_9, window_bounds = array<i64: 8, 128>}]} {
    %c0 = arith.constant 0 : index
    %c0_0 = arith.constant 0 : index
    %0 = vector.load %arg1[%c0, %c0_0] : memref<8x128xf32, #tpu.memory_space<vmem>>, vector<8x128xf32>
    %1 = arith.truncf %0 : vector<8x128xf32> to vector<8x128xbf16>
    %c0_1 = arith.constant 0 : index
    %c0_2 = arith.constant 0 : index
    %2 = vector.load %arg2[%c0_1, %c0_2] : memref<128x256xbf16, #tpu.memory_space<vmem>>, vector<128x256xbf16>
    %cst = arith.constant dense<0.000000e+00> : vector<8x256xf32>
    %3 = tpu.matmul %1, %2, %cst {dimension_numbers = #tpu.dot_dimension_numbers<[1], [0], [0], [1], [0, 0, 1, 1], [], []>} : vector<8x128xbf16>, vector<128x256xbf16>, vector<8x256xf32> -> vector<8x256xf32>
    %c0_3 = arith.constant 0 : index
    %c0_4 = arith.constant 0 : index
    %4 = vector.load %arg3[%c0_3, %c0_4] : memref<1x256xf32, #tpu.memory_space<vmem>>, vector<1x256xf32>
    %5 = vector.broadcast %4 : vector<1x256xf32> to vector<8x256xf32>
    %6 = arith.addf %3, %5 : vector<8x256xf32>
    %7 = math.tanh %6 : vector<8x256xf32>
    %8 = vector.extract_strided_slice %7 {offsets = [0, 0], sizes = [8, 128], strides = [1, 1]} : vector<8x256xf32> to vector<8x128xf32>
    %9 = vector.extract_strided_slice %7 {offsets = [0, 128], sizes = [8, 128], strides = [1, 1]} : vector<8x256xf32> to vector<8x128xf32>
    %c0_5 = arith.constant 0 : index
    %c0_6 = arith.constant 0 : index
    %10 = vector.load %arg8[%c0_5, %c0_6] : memref<1x128xf32, #tpu.memory_space<vmem>>, vector<1x128xf32>
    %11 = vector.broadcast %10 : vector<1x128xf32> to vector<8x128xf32>
    %12 = arith.mulf %9, %11 : vector<8x128xf32>
    %cst_7 = arith.constant dense<0.000000e+00> : vector<8xf32>
    %13 = vector.multi_reduction <add>, %12, %cst_7 [1] : vector<8x128xf32> to vector<8xf32>
    %14 = vector.shape_cast %13 : vector<8xf32> to vector<8x1xf32>
    %c0_8 = arith.constant 0 : index
    %c0_9 = arith.constant 0 : index
    %15 = vector.load %arg9[%c0_8, %c0_9] : memref<1x1xf32, #tpu.memory_space<vmem>>, vector<1x1xf32>
    %16 = vector.broadcast %15 : vector<1x1xf32> to vector<8x1xf32>
    %17 = arith.addf %14, %16 : vector<8x1xf32>
    %18 = arith.mulf %9, %9 : vector<8x128xf32>
    %cst_10 = arith.constant 1.000000e+00 : f32
    %19 = vector.broadcast %cst_10 : f32 to vector<8x128xf32>
    %20 = arith.subf %19, %18 : vector<8x128xf32>
    %21 = vector.broadcast %10 : vector<1x128xf32> to vector<8x128xf32>
    %22 = arith.mulf %20, %21 : vector<8x128xf32>
    %23 = tpu.concatenate %8, %22 in 1 : vector<8x128xf32>, vector<8x128xf32> -> vector<8x256xf32>
    %24 = arith.truncf %23 : vector<8x256xf32> to vector<8x256xbf16>
    %c0_11 = arith.constant 0 : index
    %c0_12 = arith.constant 0 : index
    %25 = vector.load %arg4[%c0_11, %c0_12] : memref<256x256xbf16, #tpu.memory_space<vmem>>, vector<256x256xbf16>
    %cst_13 = arith.constant dense<0.000000e+00> : vector<8x256xf32>
    %26 = tpu.matmul %24, %25, %cst_13 {dimension_numbers = #tpu.dot_dimension_numbers<[1], [0], [0], [1], [0, 0, 1, 1], [], []>} : vector<8x256xbf16>, vector<256x256xbf16>, vector<8x256xf32> -> vector<8x256xf32>
    %27 = vector.extract_strided_slice %26 {offsets = [0, 0], sizes = [8, 128], strides = [1, 1]} : vector<8x256xf32> to vector<8x128xf32>
    %c0_14 = arith.constant 0 : index
    %c0_15 = arith.constant 0 : index
    %28 = vector.load %arg5[%c0_14, %c0_15] : memref<1x128xf32, #tpu.memory_space<vmem>>, vector<1x128xf32>
    %29 = vector.broadcast %28 : vector<1x128xf32> to vector<8x128xf32>
    %30 = arith.addf %27, %29 : vector<8x128xf32>
    %31 = math.tanh %30 : vector<8x128xf32>
    %32 = vector.extract_strided_slice %26 {offsets = [0, 128], sizes = [8, 128], strides = [1, 1]} : vector<8x256xf32> to vector<8x128xf32>
    %33 = arith.truncf %31 : vector<8x128xf32> to vector<8x128xbf16>
    %c0_16 = arith.constant 0 : index
    %c0_17 = arith.constant 0 : index
    %34 = vector.load %arg6[%c0_16, %c0_17] : memref<128x128xbf16, #tpu.memory_space<vmem>>, vector<128x128xbf16>
    %cst_18 = arith.constant dense<0.000000e+00> : vector<8x128xf32>
    %35 = tpu.matmul %33, %34, %cst_18 {dimension_numbers = #tpu.dot_dimension_numbers<[1], [0], [0], [1], [0, 0, 1, 1], [], []>} : vector<8x128xbf16>, vector<128x128xbf16>, vector<8x128xf32> -> vector<8x128xf32>
    %c0_19 = arith.constant 0 : index
    %c0_20 = arith.constant 0 : index
    %36 = vector.load %arg7[%c0_19, %c0_20] : memref<1x128xf32, #tpu.memory_space<vmem>>, vector<1x128xf32>
    %37 = vector.broadcast %36 : vector<1x128xf32> to vector<8x128xf32>
    %38 = arith.addf %35, %37 : vector<8x128xf32>
    %39 = arith.mulf %32, %32 : vector<8x128xf32>
    %cst_21 = arith.constant dense<0.000000e+00> : vector<8xf32>
    %40 = vector.multi_reduction <add>, %39, %cst_21 [1] : vector<8x128xf32> to vector<8xf32>
    %41 = vector.shape_cast %40 : vector<8xf32> to vector<8x1xf32>
    %cst_22 = arith.constant 0.000000e+00 : f32
    %42 = vector.broadcast %cst_22 : f32 to vector<8x1xf32>
    %43 = arith.cmpf ogt, %41, %42 : vector<8x1xf32>
    %44 = tpu.reciprocal %41 {approx = true} : vector<8x1xf32> -> vector<8x1xf32>
    %cst_23 = arith.constant 0.000000e+00 : f32
    %45 = vector.broadcast %cst_23 : f32 to vector<8x1xf32>
    %46 = arith.select %43, %44, %45 : vector<8x1xi1>, vector<8x1xf32>
    %cst_24 = arith.constant 5.000000e-01 : f32
    %47 = vector.broadcast %cst_24 : f32 to vector<8x1xf32>
    %48 = arith.mulf %47, %17 : vector<8x1xf32>
    %49 = arith.mulf %48, %46 : vector<8x1xf32>
    %50 = vector.broadcast %49 : vector<8x1xf32> to vector<8x128xf32>
    %51 = arith.mulf %50, %32 : vector<8x128xf32>
    %52 = arith.subf %38, %51 : vector<8x128xf32>
    %c0_25 = arith.constant 0 : index
    %c0_26 = arith.constant 0 : index
    %53 = vector.load %arg10[%c0_25, %c0_26] : memref<8x128xf32, #tpu.memory_space<vmem>>, vector<8x128xf32>
    tpu.vector_store %arg10[%c0_25, %c0_26], %52 {strides = array<i32>} : memref<8x128xf32, #tpu.memory_space<vmem>>, vector<8x128xf32>,
    return
  }
  func.func @transform_0(%arg0: i32) -> (i32, i32) {
    %c0_i32 = arith.constant 0 : i32
    %c0_i32_0 = arith.constant 0 : i32
    return %arg0, %c0_i32 : i32, i32
  }
  func.func @transform_1(%arg0: i32) -> (i32, i32) {
    %c0_i32 = arith.constant 0 : i32
    %c0_i32_0 = arith.constant 0 : i32
    %c0_i32_1 = arith.constant 0 : i32
    return %c0_i32, %c0_i32_0 : i32, i32
  }
  func.func @transform_2(%arg0: i32) -> (i32, i32) {
    %c0_i32 = arith.constant 0 : i32
    %c0_i32_0 = arith.constant 0 : i32
    %c0_i32_1 = arith.constant 0 : i32
    return %c0_i32, %c0_i32_0 : i32, i32
  }
  func.func @transform_3(%arg0: i32) -> (i32, i32) {
    %c0_i32 = arith.constant 0 : i32
    %c0_i32_0 = arith.constant 0 : i32
    %c0_i32_1 = arith.constant 0 : i32
    return %c0_i32, %c0_i32_0 : i32, i32
  }
  func.func @transform_4(%arg0: i32) -> (i32, i32) {
    %c0_i32 = arith.constant 0 : i32
    %c0_i32_0 = arith.constant 0 : i32
    %c0_i32_1 = arith.constant 0 : i32
    return %c0_i32, %c0_i32_0 : i32, i32
  }
  func.func @transform_5(%arg0: i32) -> (i32, i32) {
    %c0_i32 = arith.constant 0 : i32
    %c0_i32_0 = arith.constant 0 : i32
    %c0_i32_1 = arith.constant 0 : i32
    return %c0_i32, %c0_i32_0 : i32, i32
  }
  func.func @transform_6(%arg0: i32) -> (i32, i32) {
    %c0_i32 = arith.constant 0 : i32
    %c0_i32_0 = arith.constant 0 : i32
    %c0_i32_1 = arith.constant 0 : i32
    return %c0_i32, %c0_i32_0 : i32, i32
  }
  func.func @transform_7(%arg0: i32) -> (i32, i32) {
    %c0_i32 = arith.constant 0 : i32
    %c0_i32_0 = arith.constant 0 : i32
    %c0_i32_1 = arith.constant 0 : i32
    return %c0_i32, %c0_i32_0 : i32, i32
  }
  func.func @transform_8(%arg0: i32) -> (i32, i32) {
    %c0_i32 = arith.constant 0 : i32
    %c0_i32_0 = arith.constant 0 : i32
    %c0_i32_1 = arith.constant 0 : i32
    return %c0_i32, %c0_i32_0 : i32, i32
  }
  func.func @transform_9(%arg0: i32) -> (i32, i32) {
    %c0_i32 = arith.constant 0 : i32
    %c0_i32_0 = arith.constant 0 : i32
    return %arg0, %c0_i32 : i32, i32
  }
}

</mosaic_0001>

<bundles_post_ra>
// kernel: snde_dynamic_forward.1
= control target key start
LH: loop header
LB: loop body
LE: loop exit
PB: predicated region body
PF: predicated region fallthrough
CT: control target
= control target key end

     0   :  { %s1776_s0 = inlined_call_operand.hbm [shape: f32[16,128], index: 0, kind: input, shape index: {}]   ;;  %s1777_s1 = inlined_call_operand.hbm [shape: bf16[128,256], index: 1, kind: input, shape index: {}]   ;;  %s1778_s2 = inlined_call_operand.vmem [shape: f32[1,256], index: 2, kind: input, shape index: {}]   ;;  %s1779_s3 = inlined_call_operand.hbm [shape: bf16[256,256], index: 3, kind: input, shape index: {}]   ;;  %s1780_s4 = inlined_call_operand.vmem [shape: f32[1,128], index: 4, kind: input, shape index: {}]   ;;  %s1781_s5 = inlined_call_operand.hbm [shape: bf16[128,128], index: 5, kind: input, shape index: {}]   ;;  %s1782_s6 = inlined_call_operand.vmem [shape: f32[1,128], index: 6, kind: input, shape index: {}]   ;;  %s1783_s7 = inlined_call_operand.vmem [shape: f32[1,128], index: 7, kind: input, shape index: {}]   ;;  %s1784_s8 = inlined_call_operand.<no memory space> [shape: f32[1,1], index: 8, kind: input, shape index: {}]   ;;  %s1785_s9 = inlined_call_operand.hbm [shape: f32[16,128], index: 9, kind: output, shape index: {}]  }
   0x1   :  { %1790 = sst [smem:[#allocation16_spill]] %s1777_s1  ;;  %v14_v0 = vstv %s1784_s8 }
   0x2   :  { %1791 = sst [smem:[#allocation17_spill]] %s1779_s3  ;;  %15 = vst [vmem:[#allocation2] sm:$0x1] %v14_v0 }
   0x3   :  { %1792 = sst [smem:[#allocation18_spill]] %s1781_s5 }
   0x4   :  { %16 = vsyncpa [#allocation4], 0 }
   0x5   :  { %18 = vsyncpa [#allocation4 + $0x1], 0 }
   0x6   :  { %19 = vsyncpa [#allocation7], 0 }
   0x7   :  { %20 = vsyncpa [#allocation10], 0 }
   0x8   :  { %21 = vsyncpa [#allocation5], 0 }
   0x9   :  { %23 = vsyncpa [#allocation5 + $0x1], 0  ;;  %s1580_s11 = smov 0   ;;  %s1582_s12 = smov 0  }
   0xa   :  { %s1584_s13 = smov 0   ;;  %s1586_s14 = smov 0  }
   0xb LB: > { %s1601_s8 = sadd.s32 4294967295, %s1513_s14   ;;  %s1054_s15 = sadd.s32 4294967294, %s1513_s14   ;;  %s1513_s14 = sphi %s1586_s14, %s1815_s14   ;;  %s1509_s13 = sphi %s1584_s13, %s1814_s13   ;;  %s1505_s12 = sphi %s1582_s12, %s1813_s12   ;;  %s1501_s11 = sphi %s1580_s11, %s1812_s11  }
   0xc   : > { %p49_p0 = scmp.ne.s32.totalorder %s1505_s12, %s1501_s11  ;;  %p1786_p1 = scmp.eq.s32.totalorder %s1601_s8, 0 }
   0xd   : > { %p247_p3 = scmp.eq.s32.totalorder %s1054_s15, 1  ;;  %p1055_p5 = scmp.ge.s32.totalorder %s1513_s14, 1 }
   0xe   : > { %p1610_p4 = por %p1786_p1, %p49_p0  ;;  %p254_p7 = scmp.lt.s32.totalorder %s1513_s14, 3 }
   0xf   : > { %p1615_p6 = por %p247_p3, %p49_p0  ;;  %s1515_s19 = smov [#allocation6]  }
  0x10   : > { %s1793_s16 = scalar_select %p1610_p4, 1, 0 }
  0x11   : > { %s1794_s17 = scalar_select %p1615_p6, 1, 0 }
  0x12   : > { %p1620_p8 = pnand %p1055_p5, %p254_p7  ;;  %s266_s20 = sshll.u32 %s1515_s19, 4  ;;  %s267_s20 = int_to_ptr.vmem [resolvable:$true] %s266_s20 }
  0x13   : > { %s1516_s22 = smov [#allocation8]   ;;  %s1517_s24 = smov [#allocation9]  }
  0x14   : > { %s1795_s18 = scalar_select %p1620_p8, 1, 0 }
  0x15   : > { %p1177_p9 = pneg %p1620_p8  ;;  %s282_s23 = sshll.u32 %s1516_s22, 4  ;;  %s283_s23 = int_to_ptr.vmem [resolvable:$true] %s282_s23 }
  0x16   : > { %s298_s25 = sshll.u32 %s1517_s24, 4  ;;  %s1346_s26 = scalar_lea.vmem %s267_s20, 2048  ;;  %s299_s25 = int_to_ptr.vmem [resolvable:$true] %s298_s25 }
  0x17   : > { %p1629_p11 = pnand %p1177_p9, %p1786_p1  ;;  %p1347_p13 = scmp.ne.s32.totalorder %s267_s20, %s1346_s26 }
  0x18   : > { %p1354_p5 = scmp.lt.s32.totalorder %s267_s20, %s267_s20  ;;  %p1355_p7 = scmp.lt.s32.totalorder %s1346_s26, %s1346_s26 }
  0x19   : > { %p1337_p12 = pneg %p1629_p11 }
  0x1a   : > { %p1356_p9 = por %p1355_p7, %p1354_p5 }
  0x1b   : > { %p1349_p0 = pnand %p1347_p13, %p1337_p12 }
  0x1d   : > { %p1350_p3 = pneg %p1349_p0 }
  0x1f   : > { %p1357_p10 = pnand %p1356_p9, %p1350_p3 }
  0x21   : > { %1360 = shalt.err (!%p1357_p10)
}
  0x22   : > { %s1518_s27 = smov 128   ;;  %s1519_s28 = smov 8  }
  0x23   : > { %s1797_s1 = sld [smem:[#allocation16_spill]]  ;;  %s1372_s10 = scalar_lea.vmem %s283_s23, 4096 }
  0x24   : > { %p1373_p1 = scmp.ne.s32.totalorder %s283_s23, %s1372_s10  ;;  %p1380_p2 = scmp.lt.s32.totalorder %s283_s23, %s283_s23 }
  0x25   : > { %p1381_p6 = scmp.lt.s32.totalorder %s1372_s10, %s1372_s10 }
  0x26   : > { %p1375_p13 = pnand %p1373_p1, %p1337_p12 }
  0x27   : > { %p1382_p5 = por %p1381_p6, %p1380_p2 }
  0x28   : > { %p1376_p0 = pneg %p1375_p13 }
  0x29   : > { %1180 = dma.hbm_to_vmem [thread:$0]  (!%p1629_p11), %s1797_s1, 2048, %s267_s20, [#allocation7], %s1518_s27, %s1518_s27, %s1519_s28  }
  0x2a   : > { %p1383_p3 = pnand %p1382_p5, %p1376_p0 }
  0x2c   : > { %1386 = shalt.err (!%p1383_p3)
}
  0x2d   : > { %s1798_s3 = sld [smem:[#allocation17_spill]]  ;;  %s1398_s20 = scalar_lea.vmem %s299_s25, 1024 }
  0x2e   : > { %p1399_p10 = scmp.ne.s32.totalorder %s299_s25, %s1398_s20  ;;  %p1406_p9 = scmp.lt.s32.totalorder %s299_s25, %s299_s25 }
  0x2f   : > { %p1407_p13 = scmp.lt.s32.totalorder %s1398_s20, %s1398_s20 }
  0x30   : > { %p1401_p7 = pnand %p1399_p10, %p1337_p12 }
  0x31   : > { %p1408_p4 = por %p1407_p13, %p1406_p9 }
  0x32   : > { %p1402_p1 = pneg %p1401_p7 }
  0x33   : > { %1183 = dma.hbm_to_vmem [thread:$0]  (!%p1629_p11), %s1798_s3, 4096, %s283_s23, [#allocation7], %s1518_s27, %s1518_s27, %s1519_s28  }
  0x34   : > { %p1409_p2 = pnand %p1408_p4, %p1402_p1 }
  0x36   : > { %1412 = shalt.err (!%p1409_p2)
}
  0x37   : > { %s1520_s22 = smov 64   ;;  %s1521_s23 = smov 4  }
  0x38   : > { %s1799_s5 = sld [smem:[#allocation18_spill]]  ;;  %s1660_s27 = sadd.s32 1, %s1513_s14  }
  0x39   : > { %s33_s28 = ssub.s32 %s1513_s14, %s1660_s27  ;;  %s36_s29 = sadd.s32 1, %s1509_s13 }
  0x3a   : > { %p34_p4 = scmp.eq.s32.totalorder %s33_s28, 0  ;;  %p43_p6 = scmp.ne.s32.totalorder %s1509_s13, %s1505_s12 }
  0x3b   : > { %p44_p12 = scmp.eq.s32.totalorder %s1513_s14, 0  ;;  %p1198_p0 = scmp.lt.s32.totalorder %s1513_s14, 2 }
  0x3c   : > { %s1670_s30 = scalar_select %p34_p4, %s1509_s13, %s36_s29  }
  0x3d   : > { %p45_p5 = por %p44_p12, %p43_p6  ;;  %p1800_p3 = scmp.eq.s32.totalorder %s1601_s8, 1 }
  0x3e   : > { %1186 = dma.hbm_to_vmem [thread:$0]  (!%p1629_p11), %s1799_s5, 1024, %s299_s25, [#allocation10], %s1520_s22, %s1520_s22, %s1521_s23  }
  0x3f   : > { %p1674_p10 = por %p1800_p3, %p43_p6  ;;  %s321_s21 = sand.u32 1, %s1509_s13  }
  0x40   : > { %s1061_s15 = sshll.u32 %s1513_s14, 7  ;;  %s1060_s25 = sshll.u32 %s321_s21, 3 }
  0x41   : > { %s1801_s10 = scalar_select %p1674_p10, 1, 0 }
  0x42   : > { %s1683_s22 = scalar_lea.hbm %s1776_s0, %s1061_s15  ;;  %s325_s23 = scalar_lea.vmem [#allocation3], %s1060_s25 }
  0x43   : > { %s332_s24 = sshll.u32 %s325_s23, 4  ;;  %p1685_p11 = pnand %p1198_p0, %p45_p5  ;;  %s333_s24 = int_to_ptr.vmem [resolvable:$true] %s332_s24 }
  0x44   : > { %s322_s28 = scalar_lea.sflag [#allocation4], %s321_s21  ;;  %s1413_s29 = scalar_lea.hbm %s1683_s22, 128 }
  0x45   : > { %p1414_p7 = scmp.ne.s32.totalorder %s1683_s22, %s1413_s29  ;;  %p1415_p1 = pneg %p1685_p11 }
  0x46   : > { %s1418_s20 = scalar_lea.hbm %s1776_s0, 256  ;;  %p1419_p2 = scmp.lt.s32.totalorder %s1683_s22, %s1776_s0 }
  0x47   : > { %p1416_p9 = pnand %p1415_p1, %p1414_p7  ;;  %p1420_p4 = scmp.lt.s32.totalorder %s1418_s20, %s1413_s29 }
  0x49   : > { %p1417_p13 = pneg %p1416_p9  ;;  %p1421_p6 = por %p1420_p4, %p1419_p2 }
  0x4b   : > { %p1422_p12 = pnand %p1421_p6, %p1417_p13 }
  0x4d   : > { %1425 = shalt.err (!%p1422_p12)
}
  0x4e   : > { %s1426_s23 = scalar_lea.vmem %s333_s24, 128  ;;  %s1522_s21 = smov [#allocation3]  }
  0x4f   : > { %p1427_p0 = scmp.ne.s32.totalorder %s333_s24, %s1426_s23  ;;  %s1431_s3 = sshll.u32 %s1522_s21, 4  ;;  %s1432_s3 = int_to_ptr.vmem [resolvable:$false] %s1431_s3 }
  0x50   : > { %s1433_s5 = scalar_lea.vmem %s1432_s3, 256  ;;  %p1434_p7 = scmp.lt.s32.totalorder %s333_s24, %s1432_s3 }
  0x51   : > { %p1429_p5 = pnand %p1427_p0, %p1415_p1  ;;  %p1435_p9 = scmp.lt.s32.totalorder %s1433_s5, %s1426_s23 }
  0x53   : > { %p1430_p3 = pneg %p1429_p5  ;;  %p1436_p10 = por %p1435_p9, %p1434_p7 }
  0x55   : > { %p1437_p8 = pnand %p1436_p10, %p1430_p3 }
  0x57   : > { %1440 = shalt.err (!%p1437_p8)
}
  0x58   : > { %1190 = dma.hbm_to_vmem [thread:$0]  (!%p1685_p11), %s1683_s22, 128, %s333_s24, %s322_s28  }
  0x59   : > { %p1803_p13 = scmp.ne.s32.totalorder %s1795_s18, 0 }
  0x5a   : > { %s1706_s1 = sand.u32 (!%p1803_p13), 1, %s1505_s12   ;;  %p1804_p8 = scmp.ne.s32.totalorder (!%p1803_p13), %s1793_s16, 0 }
  0x5b   : > { %341 = sbr.rel (%p1803_p13) target bundleno = 850 (0x352), region = 56  ;;  %s1063_s29 = sshll.u32 (!%p1803_p13), %s1706_s1, 3 }
  0x5c   : > { %s344_s3 = scalar_lea.sflag (!%p1803_p13), [#allocation4], %s1706_s1  ;;  %s1712_s5 = scalar_lea.vmem (!%p1803_p13), [#allocation3], %s1063_s29 }
  0x60   : > { %1484 = dma.done.wait (%p1804_p8), %s344_s3, 128  }
  0x61   : > { %1486 = vsyncadd (%p1804_p8), %s344_s3, 4294967168  ;;  %p1805_p10 = scmp.eq.s32.totalorder %s1601_s8, 0 }
  0x63   : > { %1488 = dma.done.wait (%p1805_p10), [#allocation7], 6144   ;;  %p1806_p11 = pmov %p1805_p10 }
  0x64   : > { %p1807_p1 = pmov %p1805_p10 }
  0x65   : > { %1490 = vsyncadd (%p1806_p11), [#allocation7], 4294961152 }
  0x66   : > { %1492 = dma.done.wait (%p1807_p1), [#allocation10], 1024   ;;  %p1808_p2 = pmov %p1807_p1 }
  0x67   : > { %v1523_v1 = vmov 0   ;;  %v1247_v2 = vld [vmem:[#allocation6 + $0x74] ss:$8 sps:$4 sm:$0xff]   ;;  %v1249_v3 = vld [vmem:[#allocation6 + $0x70] ss:$8 sps:$4 sm:$0xff]   ;;  %v1524_v53 = vmov 0.0   ;;  %v415_v56 = vlaneseq }
  0x68   : > { %1494 = vsyncadd (%p1808_p2), [#allocation10], 4294966272  ;;  %537 = vmatprep.mubr.bf16.mxu0 %v1523_v1  ;;  %1245 = vset.pattern.permute.xlu1 %v1523_v1  ;;  %v1250_v4 = vld [vmem:[#allocation6 + $0x64] ss:$8 sps:$4 sm:$0xff]   ;;  %v1252_v5 = vld [vmem:[#allocation6 + $0x60] ss:$8 sps:$4 sm:$0xff]  }
  0x69   : > { %1246 = vset.pattern.permute.xlu0 %v1523_v1  ;;  %505 = vmatprep.subr.bf16.mxu0 %v1247_v2  ;;  %v1253_v6 = vld [vmem:[#allocation6 + $0x54] ss:$8 sps:$4 sm:$0xff]   ;;  %v1255_v7 = vld [vmem:[#allocation6 + $0x50] ss:$8 sps:$4 sm:$0xff]   ;;  %v1256_v8 = vld [vmem:[#allocation6 + $0x44] ss:$8 sps:$4 sm:$0xff]  }
  0x6a   : > { %506 = vmatpush1.bf16.msra.mxu0 %v1249_v3  ;;  %v1258_v9 = vld [vmem:[#allocation6 + $0x40] ss:$8 sps:$4 sm:$0xff]   ;;  %v1259_v10 = vld [vmem:[#allocation6 + $0x34] ss:$8 sps:$4 sm:$0xff]   ;;  %v1273_v12 = vld [vmem:[#allocation8 + $0x70] ss:$8 sps:$4 sm:$0xff]  }
  0x6b   : > { %507 = vmatprep.subr.bf16.mxu0 %v1250_v4  ;;  %v1271_v11 = vld [vmem:[#allocation8 + $0x74] ss:$8 sps:$4 sm:$0xff]   ;;  %v1274_v13 = vld [vmem:[#allocation8 + $0x64] ss:$8 sps:$4 sm:$0xff]   ;;  %v1261_v14 = vld [vmem:[#allocation6 + $0x30] ss:$8 sps:$4 sm:$0xff]  }
  0x6c   : > { %763 = vmatprep.subr.bf16.mxu1 %v1271_v11  ;;  %v1276_v15 = vld [vmem:[#allocation8 + $0x60] ss:$8 sps:$4 sm:$0xff]   ;;  %v1277_v16 = vld [vmem:[#allocation8 + $0x54] ss:$8 sps:$4 sm:$0xff]   ;;  %v1262_v17 = vld [vmem:[#allocation6 + $0x24] ss:$8 sps:$4 sm:$0xff]  }
  0x6d   : > { %764 = vmatpush1.bf16.msra.mxu1 %v1273_v12  ;;  %v1264_v18 = vld [vmem:[#allocation6 + $0x20] ss:$8 sps:$4 sm:$0xff]   ;;  %v1279_v19 = vld [vmem:[#allocation8 + $0x50] ss:$8 sps:$4 sm:$0xff]   ;;  %v1280_v20 = vld [vmem:[#allocation8 + $0x44] ss:$8 sps:$4 sm:$0xff]  }
  0x6e   : > { %508 = vmatpush1.bf16.msra.mxu0 %v1252_v5  ;;  %765 = vmatprep.subr.bf16.mxu1 %v1274_v13  ;;  %v1265_v21 = vld [vmem:[#allocation6 + $0x14] ss:$8 sps:$4 sm:$0xff]   ;;  %v1267_v22 = vld [vmem:[#allocation6 + $0x10] ss:$8 sps:$4 sm:$0xff]   ;;  %v1268_v23 = vld [vmem:[#allocation6 + $0x4] ss:$8 sps:$4 sm:$0xff]  }
  0x6f   : > { %509 = vmatprep.subr.bf16.mxu0 %v1253_v6  ;;  %v1282_v24 = vld [vmem:[#allocation8 + $0x40] ss:$8 sps:$4 sm:$0xff]   ;;  %v1283_v25 = vld [vmem:[#allocation8 + $0x34] ss:$8 sps:$4 sm:$0xff]   ;;  %v1285_v26 = vld [vmem:[#allocation8 + $0x30] ss:$8 sps:$4 sm:$0xff]  }
  0x70   : > { %v1270_v27 = vld [vmem:[#allocation6] ss:$8 sps:$4 sm:$0xff]   ;;  %v395_v28 = vld [vmem:[%s1712_s5] sm:$0xff]  ;;  %v1286_v29 = vld [vmem:[#allocation8 + $0x24] ss:$8 sps:$4 sm:$0xff]   ;;  %v416_v57 = vshrl.u32 %v415_v56, 7 }
  0x71   : > { %766 = vmatpush1.bf16.msra.mxu1 %v1276_v15  ;;  %v1288_v30 = vld [vmem:[#allocation8 + $0x20] ss:$8 sps:$4 sm:$0xff]   ;;  %v1289_v31 = vld [vmem:[#allocation8 + $0x14] ss:$8 sps:$4 sm:$0xff]   ;;  %v396_v32 = vpack.c.bf16 %v395_v28, %v395_v28  ;;  %v1291_v33 = vld [vmem:[#allocation8 + $0x10] ss:$8 sps:$4 sm:$0xff]  }
  0x72   : > { %510 = vmatpush1.bf16.msra.mxu0 %v1255_v7  ;;  %767 = vmatprep.subr.bf16.mxu1 %v1277_v16  ;;  %v1292_v34 = vld [vmem:[#allocation8 + $0x4] ss:$8 sps:$4 sm:$0xff]   ;;  %v1294_v35 = vld [vmem:[#allocation8] ss:$8 sps:$4 sm:$0xff]   ;;  %v1295_v36 = vld [vmem:[#allocation8 + $0xf4] ss:$8 sps:$4 sm:$0xff]  }
  0x73   : > { %511 = vmatprep.subr.bf16.mxu0 %v1256_v8  ;;  %v1297_v37 = vld [vmem:[#allocation8 + $0xf0] ss:$8 sps:$4 sm:$0xff]   ;;  %v1298_v38 = vld [vmem:[#allocation8 + $0xe4] ss:$8 sps:$4 sm:$0xff]   ;;  %v1300_v39 = vld [vmem:[#allocation8 + $0xe0] ss:$8 sps:$4 sm:$0xff]  }
  0x74   : > { %v1301_v40 = vld [vmem:[#allocation8 + $0xd4] ss:$8 sps:$4 sm:$0xff]   ;;  %v1303_v41 = vld [vmem:[#allocation8 + $0xd0] ss:$8 sps:$4 sm:$0xff]   ;;  %v1304_v42 = vld [vmem:[#allocation8 + $0xc4] ss:$8 sps:$4 sm:$0xff]  }
  0x75   : > { %768 = vmatpush1.bf16.msra.mxu1 %v1279_v19  ;;  %v1306_v43 = vld [vmem:[#allocation8 + $0xc0] ss:$8 sps:$4 sm:$0xff]   ;;  %v1307_v44 = vld [vmem:[#allocation8 + $0xb4] ss:$8 sps:$4 sm:$0xff]   ;;  %v1309_v45 = vld [vmem:[#allocation8 + $0xb0] ss:$8 sps:$4 sm:$0xff]  }
  0x76   : > { %512 = vmatpush1.bf16.msra.mxu0 %v1258_v9  ;;  %769 = vmatprep.subr.bf16.mxu1 %v1280_v20  ;;  %v1310_v46 = vld [vmem:[#allocation8 + $0xa4] ss:$8 sps:$4 sm:$0xff]   ;;  %v1312_v47 = vld [vmem:[#allocation8 + $0xa0] ss:$8 sps:$4 sm:$0xff]   ;;  %v1313_v48 = vld [vmem:[#allocation8 + $0x94] ss:$8 sps:$4 sm:$0xff]  }
  0x77   : > { %513 = vmatprep.subr.bf16.mxu0 %v1259_v10  ;;  %v1315_v49 = vld [vmem:[#allocation8 + $0x90] ss:$8 sps:$4 sm:$0xff]   ;;  %v1316_v50 = vld [vmem:[#allocation8 + $0x84] ss:$8 sps:$4 sm:$0xff]   ;;  %v1318_v51 = vld [vmem:[#allocation8 + $0x80] ss:$8 sps:$4 sm:$0xff]  }
  0x78   : > { %v1319_v52 = vld [vmem:[#allocation9 + $0x38] sm:$0xff]   ;;  %v1320_v54 = vld [vmem:[#allocation9 + $0x30] sm:$0xff]   ;;  %v1321_v55 = vld [vmem:[#allocation9 + $0x28] sm:$0xff]   ;;  %v421_v58 = vsub.s32 1, %v416_v57  ;;  %v417_v60 = vsub.s32 0, %v416_v57  ;;  %vm1525_vm0 = vmmov 0  }
  0x79   : > { %770 = vmatpush1.bf16.msra.mxu1 %v1282_v24  ;;  %v413_v59 = vld [vmem:[%s1778_s2] sm:$0x3]  ;;  %v1323_v15 = vld [vmem:[#allocation9 + $0x18] sm:$0xff]   ;;  %s1129_s20 = sshll.u32 %s1601_s8, 7  ;;  %s393_s25 = scalar_lea.vmem [#allocation11], %s1063_s29 }
  0x7a   : > { %514 = vmatpush1.bf16.msra.mxu0 %v1261_v14  ;;  %771 = vmatprep.subr.bf16.mxu1 %v1283_v25  ;;  %v422_v61 = vrot.slane %v413_v59, %v421_v58  ;;  %v418_v63 = vrot.slane %v413_v59, %v417_v60  ;;  %v1084_v5 = vld [vmem:[%s1783_s7] ss:$0 sm:$0xff]  ;;  %v1322_v14 = vld [vmem:[#allocation9 + $0x20] sm:$0xff]   ;;  %v1324_v16 = vld [vmem:[#allocation9 + $0x10] sm:$0xff]   ;;  %s955_s23 = sshll.u32 %s393_s25, 4  ;;  %s953_s5 = scalar_lea.hbm %s1785_s9, %s1129_s20  ;;  %s956_s23 = int_to_ptr.vmem [resolvable:$true] %s955_s23 }
  0x7b   : > { %515 = vmatprep.subr.bf16.mxu0 %v1262_v17  ;;  %v1325_v17 = vld [vmem:[#allocation9 + $0x8] sm:$0xff]   ;;  %s942_s16 = scalar_lea.sflag [#allocation5], %s1706_s1  ;;  %s1441_s18 = scalar_lea.vmem %s956_s23, 128 }
  0x7c   : > { %v1118_v19 = vld [vmem:[%s1780_s4] ss:$0 sm:$0xff]  ;;  %p1442_p4 = scmp.ne.s32.totalorder %s956_s23, %s1441_s18  ;;  %p1809_p6 = scmp.ne.s32.totalorder %s1801_s10, 0 }
  0x7d   : > { %772 = vmatpush1.bf16.msra.mxu1 %v1285_v26  ;;  %s1526_s22 = smov [#allocation11]  }
  0x7e   : > { %516 = vmatpush1.bf16.msra.mxu0 %v1264_v18  ;;  %773 = vmatprep.subr.bf16.mxu1 %v1286_v29  ;;  %v1326_v18 = vld [vmem:[#allocation9] sm:$0xff]   ;;  %v1085_v29 = vld [vmem:[#allocation2] ss:$0 sm:$0xff]  ;;  %p1443_p12 = pnand %p1442_p4, %p1809_p6  ;;  %s1445_s8 = sshll.u32 %s1526_s22, 4  ;;  %s1446_s8 = int_to_ptr.vmem [resolvable:$false] %s1445_s8 }
  0x7f   : > { %517 = vmatprep.subr.bf16.mxu0 %v1265_v21  ;;  %s1447_s29 = scalar_lea.vmem %s1446_s8, 256  ;;  %p1448_p5 = scmp.lt.s32.totalorder %s956_s23, %s1446_s8 }
  0x80   : > { %p1444_p0 = pneg %p1443_p12  ;;  %p1449_p3 = scmp.lt.s32.totalorder %s1447_s29, %s1441_s18 }
  0x81   : > { %774 = vmatpush1.bf16.msra.mxu1 %v1288_v30 }
  0x82   : > { %518 = vmatpush1.bf16.msra.mxu0 %v1267_v22  ;;  %775 = vmatprep.subr.bf16.mxu1 %v1289_v31  ;;  %p1450_p7 = por %p1449_p3, %p1448_p5 }
  0x83   : > { %519 = vmatprep.subr.bf16.mxu0 %v1268_v23 }
  0x84   : > { %p1451_p9 = pnand %p1450_p7, %p1444_p0 }
  0x85   : > { %776 = vmatpush1.bf16.msra.mxu1 %v1291_v33 }
  0x86   : > { %520 = vmatpush1.bf16.msra.mxu0 %v1270_v27  ;;  %777 = vmatprep.subr.bf16.mxu1 %v1292_v34 }
  0x87   : > { %1141 = vmatprep.subr.bf16.mxu0 %v1524_v53 }
  0x89   : > { %538 = vmatmul.mubr.bf16.vlgmr.msra.gmra.mxu0 %v396_v32  ;;  %778 = vmatpush1.bf16.msra.mxu1 %v1294_v35 }
  0x8a   : > { %779 = vmatprep.subr.bf16.mxu1 %v1295_v36  ;;  %1142 = vmatpush3.bf16.msra.mxu0 %v1319_v52 }
  0x8b   : > { %1143 = vmatprep.subr.bf16.mxu0 %v1524_v53  ;;  %1157 = vmatprep.mubr.msk.bf16.mxu0 %vm1525_vm0, %v1524_v53 }
  0x8d   : > { %780 = vmatpush2.bf16.msra.mxu1 %v1297_v37 }
  0x8e   : > { %781 = vmatprep.subr.bf16.mxu1 %v1298_v38  ;;  %1144 = vmatpush3.bf16.msra.mxu0 %v1320_v54 }
  0x8f   : > { %1145 = vmatprep.subr.bf16.mxu0 %v1524_v53 }
  0x91   : > { %782 = vmatpush2.bf16.msra.mxu1 %v1300_v39 }
  0x92   : > { %783 = vmatprep.subr.bf16.mxu1 %v1301_v40  ;;  %1146 = vmatpush3.bf16.msra.mxu0 %v1321_v55  ;;  %v1119_v40 = vld [vmem:[%s1782_s6] ss:$0 sm:$0xff] }
  0x93   : > { %1147 = vmatprep.subr.bf16.mxu0 %v1524_v53 }
  0x95   : > { %784 = vmatpush2.bf16.msra.mxu1 %v1303_v41 }
  0x96   : > { %785 = vmatprep.subr.bf16.mxu1 %v1304_v42  ;;  %1148 = vmatpush3.bf16.msra.mxu0 %v1322_v14 }
  0x97   : > { %1149 = vmatprep.subr.bf16.mxu0 %v1524_v53 }
  0x99   : > { %786 = vmatpush2.bf16.msra.mxu1 %v1306_v43 }
  0x9a   : > { %787 = vmatprep.subr.bf16.mxu1 %v1307_v44  ;;  %1150 = vmatpush3.bf16.msra.mxu0 %v1323_v15 }
  0x9b   : > { %1151 = vmatprep.subr.bf16.mxu0 %v1524_v53 }
  0x9d   : > { %788 = vmatpush2.bf16.msra.mxu1 %v1309_v45 }
  0x9e   : > { %789 = vmatprep.subr.bf16.mxu1 %v1310_v46  ;;  %1152 = vmatpush3.bf16.msra.mxu0 %v1324_v16 }
  0x9f   : > { %1153 = vmatprep.subr.bf16.mxu0 %v1524_v53 }
  0xa1   : > { %790 = vmatpush2.bf16.msra.mxu1 %v1312_v47 }
  0xa2   : > { %791 = vmatprep.subr.bf16.mxu1 %v1313_v48  ;;  %1154 = vmatpush3.bf16.msra.mxu0 %v1325_v17 }
  0xa3   : > { %1155 = vmatprep.subr.bf16.mxu0 %v1524_v53 }
  0xa5   : > { %792 = vmatpush2.bf16.msra.mxu1 %v1315_v49 }
  0xa6   : > { %793 = vmatprep.subr.bf16.mxu1 %v1316_v50  ;;  %1156 = vmatpush3.bf16.msra.mxu0 %v1326_v18 }
  0xa9   : > { %794 = vmatpush2.bf16.msra.mxu1 %v1318_v51 }
 0x149   : > { %v539_v62 = vpop.f32.mrf.mxu0 }
 0x14a   : > { %v540_v3 = vadd.f32 %v539_v62, %v418_v63 }
 0x14b   : > { %v541_v0 = vpop.f32.mrf.mxu0 }
 0x14c   : > { %v542_v1 = vadd.f32 %v541_v0, %v422_v61 }
 0x14d   : > { %v543_v2 = vpop.f32.mrf.mxu0 }
 0x14e   : > { %1327 = vtanh.f32 %v542_v1 }
 0x14f   : > { %v544_v4 = vpop.f32.mrf.mxu0  ;;  %1329 = vtanh.f32 %v540_v3 }
 0x15b   : > { %v1328_v6 = vpop.eup %1327 }
 0x15c   : > { %v566_v7 = vmul.f32 %v1328_v6, %v1328_v6  ;;  %v555_v8 = vmul.f32 %v1328_v6, %v1084_v5  ;;  %v1330_v10 = vpop.eup %1329 }
 0x15d   : > { %v569_v13 = vpack.c.bf16 %v1330_v10, %v1330_v10 }
 0x15e   : > { %v567_v9 = vsub.f32 1.0, %v566_v7 }
 0x160   : > { %v568_v11 = vmul.f32 %v1084_v5, %v567_v9 }
 0x162   : > { %v570_v12 = vpack.c.bf16 %v568_v11, %v568_v11 }
 0x164   : > { %795 = vmatprep.mubr.bf16.mxu1 %v570_v12 }
 0x165   : > { %796 = vmatmul.mubr.bf16.vlgmr.msra.gmra.mxu1 %v569_v13 }
 0x225   : > { %v797_v20 = vpop.f32.mrf.mxu1 }
 0x226   : > { %v811_v21 = vadd.f32 %v1118_v19, %v797_v20 }
 0x227   : > { %v799_v22 = vpop.f32.mrf.mxu1 }
 0x228   : > { %1331 = vtanh.f32 %v811_v21  ;;  %v925_v23 = vmul.f32 %v799_v22, %v799_v22 }
 0x229   : > { %v801_v24 = vpop.f32.mrf.mxu1 }
 0x22a   : > { %926 = vadd.xlane.f32.xlu0 %v925_v23 }
 0x22b   : > { %v802_v25 = vpop.f32.mrf.mxu1 }
 0x22e   : > { %556 = vadd.xlane.f32.xlu0 %v555_v8 }
 0x235   : > { %v1332_v26 = vpop.eup %1331 }
 0x236   : > { %v813_v27 = vpack.c.bf16 %v1332_v26, %v1332_v26 }
 0x238   : > { %1158 = vmatmul.mubr.bf16.vlgmr.msra.gmra.mxu0 %v813_v27 }
 0x2b3   : > { %v927_v28 = vpop.xlane.xlu0 %926 }
 0x2b4   : > { %1333 = vrcp.f32 %v927_v28  ;;  %vm928_vm1 = vcmp.gt.f32.partialorder %v927_v28, 0.0 }
 0x2b7   : > { %v557_v30 = vpop.xlane.xlu0 %556 }
 0x2b8   : > { %v565_v31 = vadd.f32 %v1085_v29, %v557_v30 }
 0x2ba   : > { %v931_v33 = vmul.f32 0.5, %v565_v31 }
 0x2c1   : > { %v1334_v32 = vpop.eup %1333 }
 0x2c2   : > { %v930_v34 = vsel %vm928_vm1, %v1334_v32, 0.0 }
 0x2c3   : > { %v932_v35 = vmul.f32 %v931_v33, %v930_v34 }
 0x2c5   : > { %935 = vperm.xlu1 %1245, %v932_v35  }
 0x2f8   : > { %v919_v36 = vpop.f32.mrf.mxu0 }
 0x2f9   : > { %v920_v42 = vadd.f32 %v1119_v40, %v919_v36 }
 0x2fa   : > { %v1159_v37 = vpop.f32.mrf.mxu0 }
 0x2fc   : > { %v922_v38 = vpop.f32.mrf.mxu0 }
 0x2fe   : > { %v1160_v39 = vpop.f32.mrf.mxu0 }
 0x340   : > { %v936_v41 = vpop.permute.xlu1 %935 }
 0x341   : > { %v938_v43 = vmul.f32 %v936_v41, %v799_v22 }
 0x343   : > { %v939_v44 = vsub.f32 %v920_v42, %v938_v43 }
 0x345   : > { %940 = vst [vmem:[%s393_s25] sm:$0xff] %v939_v44 }
 0x346   : > { %1454 = shalt.err (!%p1451_p9)
}
 0x347   : > { %s1455_s24 = scalar_lea.hbm %s953_s5, 128  ;;  %s1459_s28 = scalar_lea.hbm %s1785_s9, 256 }
 0x348   : > { %p1456_p13 = scmp.ne.s32.totalorder %s953_s5, %s1455_s24  ;;  %p1460_p11 = scmp.lt.s32.totalorder %s953_s5, %s1785_s9 }
 0x349   : > { %p1461_p1 = scmp.lt.s32.totalorder %s1459_s28, %s1455_s24 }
 0x34a   : > { %p1457_p8 = pnand %p1456_p13, %p1809_p6 }
 0x34b   : > { %p1462_p2 = por %p1461_p1, %p1460_p11 }
 0x34c   : > { %p1458_p10 = pneg %p1457_p8 }
 0x34e   : > { %p1463_p4 = pnand %p1462_p2, %p1458_p10 }
 0x350   : > { %1466 = shalt.err (!%p1463_p4)
}
 0x351   : > { %1175 = dma.vmem_to_hbm [thread:$0]  (%p1809_p6), %s956_s23, 128, %s953_s5, %s942_s16  }
 0x352 PF: > { %s967_s20 = sand.u32 1, %s1501_s11   ;;  %p1810_p12 = scmp.ne.s32.totalorder %s1794_s17, 0 }
 0x353   : > { %p1811_p0 = scmp.ge.s32.totalorder %s1513_s14, 2  ;;  %s968_s25 = scalar_lea.sflag [#allocation5], %s967_s20 }
 0x355   : > { %p1192_p5 = pnand %p1811_p0, %p1810_p12 }
 0x357   : > { %p1193_p3 = pneg %p1192_p5 }
 0x359   : > { %1496 = dma.done.wait (%p1193_p3), %s968_s25, 128  }
 0x35a   : > { %1498 = vsyncadd (%p1193_p3), %s968_s25, 4294967168  ;;  %p26_p7 = scmp.ge.s32.totalorder %s1660_s27, 4   ;;  %s1812_s11 = smov %s1505_s12 }
 0x35b   : > { %s1813_s12 = smov %s1509_s13  ;;  %s1814_s13 = smov %s1670_s30 }
 0x35c   : > { %s1815_s14 = smov %s1660_s27  ;;  %28 = sbr.rel (!%p26_p7) target bundleno = 11 (0xb), region = 113 }
 0x361   :  { %973 = vsyncpa [#allocation4], 1 }
 0x362   :  { %975 = vsyncpa [#allocation4 + $0x1], 1 }
 0x363   :  { %976 = vsyncpa [#allocation7], 1 }
 0x364   :  { %977 = vsyncpa [#allocation10], 1 }
 0x365   :  { %978 = vsyncpa [#allocation5], 1 }
 0x366   :  { %980 = vsyncpa [#allocation5 + $0x1], 1 }

</bundles_post_ra>
